<compile_context>
chip_gen: v7x
topology: tpu7x:2x2x1
jax: 0.10.0
libtpu: 0.0.40
codegen_flags: <defaults>
</compile_context>

<pallas_src>
import jax
import jax.numpy as jnp
from jax.experimental import pallas as pl
from jax.experimental.pallas import tpu as pltpu

IN_FEATURES = 784
OUT_FEATURES = 10
OUT_PAD = 128                      # lane-dense padded output width
TILE_M = 4096                      # max batch rows per grid step
VMEM_LIMIT_BYTES = 48 * 1024 * 1024


def _round_up(x, m):
    return ((x + m - 1) // m) * m


def _default_mxu_dtype():
    """bf16 MXU inputs on v5e (f32 matmul is the binding unit there); f32 elsewhere."""
    try:
        kind = jax.devices()[0].device_kind.lower()
    except Exception:
        return jnp.float32
    if "v5e" in kind or "v5 lite" in kind or "v5lite" in kind:
        return jnp.bfloat16
    return jnp.float32


def prepare_params(weight, bias, mxu_dtype=None):
    """Call-invariant parameter prep (hoisted out of the per-call path).

    weight: (10, 784) PyTorch layout, bias: (10,).
    Returns lane-padded (784, 128) weight and (1, 128) f32 bias.
    """
    if mxu_dtype is None:
        mxu_dtype = _default_mxu_dtype()
    w_pad = (
        jnp.zeros((IN_FEATURES, OUT_PAD), mxu_dtype)
        .at[:, :OUT_FEATURES]
        .set(weight.T.astype(mxu_dtype))
    )
    b_pad = (
        jnp.zeros((1, OUT_PAD), jnp.float32)
        .at[:, :OUT_FEATURES]
        .set(bias.astype(jnp.float32))
    )
    return w_pad, b_pad


def linear_kernel(x_ref, w_ref, b_ref, o_ref):
    # x_ref: (tile_m, 784), w_ref: (784, 128), b_ref: (1, 128), o_ref: (tile_m, 128)
    # Cast x to the weight's dtype (no-op for f32; bf16 on v5e). MXU accumulates f32.
    acc = jnp.dot(
        x_ref[...].astype(w_ref.dtype), w_ref[...],
        preferred_element_type=jnp.float32,
    )
    o_ref[...] = (acc + b_ref[...]).astype(o_ref.dtype)


@jax.jit
def linear_forward(x, w_pad, b_pad):
    """x: (N, ...) with prod(...) == 784 (or already (N, 784))."""
    x2d = x.reshape(-1, IN_FEATURES)
    n = x2d.shape[0]
    dtype = x2d.dtype

    # Pad rows only to the sublane multiple (8) — at most 7 rows, usually none.
    n_pad8 = _round_up(n, 8)
    if n_pad8 != n:
        x2d = jnp.pad(x2d, ((0, n_pad8 - n), (0, 0)))

    # Tile choice: big enough to amortize per-step overhead, never larger than the
    # (8-rounded) batch, and capped so the grid has >= 2 steps when possible so the
    # "parallel" axis can shard across both v7x TensorCores.
    tile_m = min(TILE_M, _round_up(pl.cdiv(n_pad8, 2), 8))
    grid = (pl.cdiv(n_pad8, tile_m),)  # ragged last block: Pallas clips boundary DMAs

    out_padded = pl.pallas_call(
        linear_kernel,
        out_shape=jax.ShapeDtypeStruct((n_pad8, OUT_PAD), dtype),
        grid_spec=pl.GridSpec(
            grid=grid,
            in_specs=[
                # x streams over the batch axis (double-buffered by the pipeline).
                pl.BlockSpec((tile_m, IN_FEATURES), lambda i: (i, 0)),
                # weight / bias: constant index_map -> VMEM resident across tiles.
                pl.BlockSpec((IN_FEATURES, OUT_PAD), lambda i: (0, 0)),
                pl.BlockSpec((1, OUT_PAD), lambda i: (0, 0)),
            ],
            out_specs=pl.BlockSpec((tile_m, OUT_PAD), lambda i: (i, 0)),
        ),
        compiler_params=pltpu.CompilerParams(
            dimension_semantics=("parallel",),
            vmem_limit_bytes=VMEM_LIMIT_BYTES,
        ),
    )(x2d, w_pad, b_pad)

    # Slice stays under this jit; only rows < n and lanes < 10 are consumed.
    return out_padded[:n, :OUT_FEATURES]


if __name__ == "__main__":
    key = jax.random.PRNGKey(0)
    kx, kw, kb = jax.random.split(key, 3)

    # Deterministic parameter init (mimics PyTorch uniform(-1/sqrt(fan_in), ...)).
    bound = 1.0 / jnp.sqrt(jnp.float32(IN_FEATURES))
    weight = jax.random.uniform(
        kw, (OUT_FEATURES, IN_FEATURES), jnp.float32, -bound, bound
    )
    bias = jax.random.uniform(kb, (OUT_FEATURES,), jnp.float32, -bound, bound)

    # Example input: NCHW MNIST-like batch, batch=2.
    x = jax.random.normal(kx, (2, 1, 28, 28), jnp.float32)

    # Hoisted, call-invariant parameter prep.
    w_pad, b_pad = prepare_params(weight, bias)

    out = linear_forward(x, w_pad, b_pad)
    out = jax.block_until_ready(out)

    # Cross-check against plain JAX reference (looser tolerance if bf16 MXU path).
    ref = x.reshape(-1, IN_FEATURES) @ weight.T + bias
    if w_pad.dtype == jnp.bfloat16:
        atol, rtol = 2e-2, 2e-2
    else:
        atol, rtol = 1e-5, 1e-5
    assert out.shape == (2, OUT_FEATURES)
    assert jnp.allclose(out, ref, atol=atol, rtol=rtol)

    print("KERNEL_OK")
</pallas_src>

<mosaic_0001>
module attributes {stable_mosaic.version = 11 : i64} {
  func.func @linear_kernel(%arg0: i32, %arg1: memref<8x784xf32, #tpu.memory_space<vmem>>, %arg2: memref<784x128xf32, #tpu.memory_space<vmem>>, %arg3: memref<1x128xf32, #tpu.memory_space<vmem>>, %arg4: memref<8x128xf32, #tpu.memory_space<vmem>>) attributes {dimension_semantics = [#tpu.dimension_semantics<parallel>], iteration_bounds = array<i64: 1>, scalar_prefetch = 0 : i64, scratch_operands = 0 : i64, tpu.core_type = #tpu.core_type<tc>, window_params = [{transform_indices = @transform_0, window_bounds = array<i64: 8, 784>}, {pipeline_mode = #tpu.pipeline_mode<synchronous>, transform_indices = @transform_1, window_bounds = array<i64: 784, 128>}, {pipeline_mode = #tpu.pipeline_mode<synchronous>, transform_indices = @transform_2, window_bounds = array<i64: 1, 128>}, {transform_indices = @transform_3, window_bounds = array<i64: 8, 128>}]} {
    %c0 = arith.constant 0 : index
    %c0_0 = arith.constant 0 : index
    %0 = vector.load %arg1[%c0, %c0_0] : memref<8x784xf32, #tpu.memory_space<vmem>>, vector<8x784xf32>
    %c0_1 = arith.constant 0 : index
    %c0_2 = arith.constant 0 : index
    %1 = vector.load %arg2[%c0_1, %c0_2] : memref<784x128xf32, #tpu.memory_space<vmem>>, vector<784x128xf32>
    %cst = arith.constant dense<0.000000e+00> : vector<8x128xf32>
    %2 = tpu.matmul %0, %1, %cst {dimension_numbers = #tpu.dot_dimension_numbers<[1], [0], [0], [1], [0, 0, 1, 1], [], []>} : vector<8x784xf32>, vector<784x128xf32>, vector<8x128xf32> -> vector<8x128xf32>
    %c0_3 = arith.constant 0 : index
    %c0_4 = arith.constant 0 : index
    %3 = vector.load %arg3[%c0_3, %c0_4] : memref<1x128xf32, #tpu.memory_space<vmem>>, vector<1x128xf32>
    %4 = vector.broadcast %3 : vector<1x128xf32> to vector<8x128xf32>
    %5 = arith.addf %2, %4 : vector<8x128xf32>
    %c0_5 = arith.constant 0 : index
    %c0_6 = arith.constant 0 : index
    %6 = vector.load %arg4[%c0_5, %c0_6] : memref<8x128xf32, #tpu.memory_space<vmem>>, vector<8x128xf32>
    tpu.vector_store %arg4[%c0_5, %c0_6], %5 {strides = array<i32>} : memref<8x128xf32, #tpu.memory_space<vmem>>, vector<8x128xf32>,
    return
  }
  func.func @transform_0(%arg0: i32) -> (i32, i32) {
    %c0_i32 = arith.constant 0 : i32
    %c0_i32_0 = arith.constant 0 : i32
    return %arg0, %c0_i32 : i32, i32
  }
  func.func @transform_1(%arg0: i32) -> (i32, i32) {
    %c0_i32 = arith.constant 0 : i32
    %c0_i32_0 = arith.constant 0 : i32
    %c0_i32_1 = arith.constant 0 : i32
    return %c0_i32, %c0_i32_0 : i32, i32
  }
  func.func @transform_2(%arg0: i32) -> (i32, i32) {
    %c0_i32 = arith.constant 0 : i32
    %c0_i32_0 = arith.constant 0 : i32
    %c0_i32_1 = arith.constant 0 : i32
    return %c0_i32, %c0_i32_0 : i32, i32
  }
  func.func @transform_3(%arg0: i32) -> (i32, i32) {
    %c0_i32 = arith.constant 0 : i32
    %c0_i32_0 = arith.constant 0 : i32
    return %arg0, %c0_i32 : i32, i32
  }
}

</mosaic_0001>

<bundles_post_ra>
// kernel: linear_forward.1
= control target key start
LH: loop header
LB: loop body
LE: loop exit
PB: predicated region body
PF: predicated region fallthrough
CT: control target
= control target key end

     0   :  { %8 = vsyncpa [#allocation3], 0  ;;  %s676_s12 = smov [#allocation2]   ;;  %s741_s0 = inlined_call_operand.vmem [shape: f32[8,784], index: 0, kind: input, shape index: {}]   ;;  %s742_s1 = inlined_call_operand.hbm [shape: f32[784,128], index: 1, kind: input, shape index: {}]   ;;  %s743_s2 = inlined_call_operand.vmem [shape: f32[1,128], index: 2, kind: input, shape index: {}]   ;;  %s744_s3 = inlined_call_operand.vmem [shape: f32[8,128], index: 3, kind: output, shape index: {}]  }
   0x1   :  { %s16_s13 = sshll.u32 %s676_s12, 4  ;;  %s652_s16 = scalar_lea.hbm %s742_s1, 12544  ;;  %s17_s13 = int_to_ptr.vmem [resolvable:$true] %s16_s13 }
   0x2   :  { %p653_p0 = scmp.ne.s32.totalorder %s742_s1, %s652_s16  ;;  %p656_p1 = scmp.lt.u32.totalorder %s652_s16, %s742_s1 }
   0x4   :  { %p658_p2 = pnand %p656_p1, %p653_p0 }
   0x6   :  { %661 = shalt.err (!%p658_p2)
}
   0x7   :  { %s662_s21 = scalar_lea.vmem %s17_s13, 12544  ;;  %p667_p4 = scmp.lt.s32.totalorder %s17_s13, %s17_s13 }
   0x8   :  { %p663_p3 = scmp.ne.s32.totalorder %s17_s13, %s662_s21  ;;  %p668_p5 = scmp.lt.s32.totalorder %s662_s21, %s662_s21 }
   0xa   :  { %p669_p6 = por %p668_p5, %p667_p4 }
   0xc   :  { %p670_p7 = pnand %p669_p6, %p663_p3 }
   0xe   :  { %673 = shalt.err (!%p670_p7)
}
   0xf   :  { %s677_s22 = smov 128   ;;  %s678_s23 = smov 8  }
  0x10   :  { %22 = dma.hbm_to_vmem [thread:$0]  %s742_s1, 12544, %s17_s13, [#allocation3], %s677_s22, %s677_s22, %s678_s23  }
  0x11   :  { %674 = dma.done.wait [#allocation3], 12544  }
  0x12   :  { %675 = vsyncadd [#allocation3], 4294954752  ;;  %v51_v0 = vld [vmem:[#allocation2 + $0x80] sm:$0xff]  ;;  %v52_v1 = vld [vmem:[#allocation2 + $0x88] sm:$0xff]  ;;  %vm680_vm0 = vmmov 0   ;;  %vm140_vm1 = vcmask 130048  }
  0x13   :  { %v35_v2 = vld [vmem:[#allocation2] sm:$0xff]  ;;  %v547_v3 = vpack.c.bf16 %v52_v1, %v51_v0  ;;  %v36_v4 = vld [vmem:[#allocation2 + $0x8] sm:$0xff]  ;;  %v53_v11 = vld [vmem:[#allocation2 + $0x90] sm:$0xff] }
  0x14   :  { %v83_v5 = vld [vmem:[#allocation2 + $0x180] sm:$0xff]  ;;  %v84_v6 = vld [vmem:[#allocation2 + $0x188] sm:$0xff]  ;;  %v549_v7 = vpack.c.bf16 %v36_v4, %v35_v2  ;;  %v54_v13 = vld [vmem:[#allocation2 + $0x98] sm:$0xff] }
  0x15   :  { %v579_v8 = vpack.c.bf16 %v84_v6, %v83_v5  ;;  %v67_v9 = vld [vmem:[#allocation2 + $0x100] sm:$0xff]  ;;  %v68_v10 = vld [vmem:[#allocation2 + $0x108] sm:$0xff]  ;;  %548 = vmatprep.subr.bf16.mxu0 %v547_v3  ;;  %v37_v14 = vld [vmem:[#allocation2 + $0x10] sm:$0xff]  ;;  %v551_v16 = vpack.c.bf16 %v54_v13, %v53_v11 }
  0x16   :  { %v581_v12 = vpack.c.bf16 %v68_v10, %v67_v9  ;;  %v38_v15 = vld [vmem:[#allocation2 + $0x18] sm:$0xff]  ;;  %550 = vmatpush3.bf16.msra.mxu0 %v549_v7  ;;  %v85_v18 = vld [vmem:[#allocation2 + $0x190] sm:$0xff]  ;;  %v55_v23 = vld [vmem:[#allocation2 + $0xa0] sm:$0xff] }
  0x17   :  { %580 = vmatprep.subr.bf16.mxu1 %v579_v8  ;;  %v553_v17 = vpack.c.bf16 %v38_v15, %v37_v14  ;;  %v86_v19 = vld [vmem:[#allocation2 + $0x198] sm:$0xff]  ;;  %v69_v20 = vld [vmem:[#allocation2 + $0x110] sm:$0xff]  ;;  %v56_v24 = vld [vmem:[#allocation2 + $0xa8] sm:$0xff]  ;;  %552 = vmatprep.subr.bf16.mxu0 %v551_v16 }
  0x18   :  { %582 = vmatpush3.bf16.msra.mxu1 %v581_v12  ;;  %v583_v21 = vpack.c.bf16 %v86_v19, %v85_v18  ;;  %v70_v22 = vld [vmem:[#allocation2 + $0x118] sm:$0xff]  ;;  %v555_v26 = vpack.c.bf16 %v56_v24, %v55_v23  ;;  %v39_v27 = vld [vmem:[#allocation2 + $0x20] sm:$0xff]  ;;  %v40_v28 = vld [vmem:[#allocation2 + $0x28] sm:$0xff] }
  0x19   :  { %v585_v25 = vpack.c.bf16 %v70_v22, %v69_v20  ;;  %v87_v29 = vld [vmem:[#allocation2 + $0x1a0] sm:$0xff]  ;;  %v88_v30 = vld [vmem:[#allocation2 + $0x1a8] sm:$0xff]  ;;  %v557_v33 = vpack.c.bf16 %v40_v28, %v39_v27  ;;  %v57_v35 = vld [vmem:[#allocation2 + $0xb0] sm:$0xff] }
  0x1a   :  { %584 = vmatprep.subr.bf16.mxu1 %v583_v21  ;;  %v71_v31 = vld [vmem:[#allocation2 + $0x120] sm:$0xff]  ;;  %v72_v32 = vld [vmem:[#allocation2 + $0x128] sm:$0xff]  ;;  %554 = vmatpush3.bf16.msra.mxu0 %v553_v17  ;;  %v587_v34 = vpack.c.bf16 %v88_v30, %v87_v29  ;;  %v58_v36 = vld [vmem:[#allocation2 + $0xb8] sm:$0xff] }
  0x1b   :  { %v41_v37 = vld [vmem:[#allocation2 + $0x30] sm:$0xff]  ;;  %556 = vmatprep.subr.bf16.mxu0 %v555_v26  ;;  %v589_v38 = vpack.c.bf16 %v72_v32, %v71_v31  ;;  %v559_v39 = vpack.c.bf16 %v58_v36, %v57_v35  ;;  %v42_v40 = vld [vmem:[#allocation2 + $0x38] sm:$0xff]  ;;  %v59_v46 = vld [vmem:[#allocation2 + $0xc0] sm:$0xff] }
  0x1c   :  { %586 = vmatpush3.bf16.msra.mxu1 %v585_v25  ;;  %v89_v41 = vld [vmem:[#allocation2 + $0x1b0] sm:$0xff]  ;;  %v90_v42 = vld [vmem:[#allocation2 + $0x1b8] sm:$0xff]  ;;  %v60_v47 = vld [vmem:[#allocation2 + $0xc8] sm:$0xff]  ;;  %v561_v48 = vpack.c.bf16 %v42_v40, %v41_v37 }
  0x1d   :  { %588 = vmatprep.subr.bf16.mxu1 %v587_v34  ;;  %v591_v43 = vpack.c.bf16 %v90_v42, %v89_v41  ;;  %v73_v44 = vld [vmem:[#allocation2 + $0x130] sm:$0xff]  ;;  %v74_v45 = vld [vmem:[#allocation2 + $0x138] sm:$0xff]  ;;  %v91_v49 = vld [vmem:[#allocation2 + $0x1c0] sm:$0xff]  ;;  %v563_v52 = vpack.c.bf16 %v60_v47, %v59_v46 }
  0x1e   :  { %558 = vmatpush3.bf16.msra.mxu0 %v557_v33  ;;  %v92_v50 = vld [vmem:[#allocation2 + $0x1c8] sm:$0xff]  ;;  %v593_v51 = vpack.c.bf16 %v74_v45, %v73_v44  ;;  %v43_v53 = vld [vmem:[#allocation2 + $0x40] sm:$0xff]  ;;  %v61_v58 = vld [vmem:[#allocation2 + $0xd0] sm:$0xff] }
  0x1f   :  { %560 = vmatprep.subr.bf16.mxu0 %v559_v39  ;;  %v44_v54 = vld [vmem:[#allocation2 + $0x48] sm:$0xff]  ;;  %v75_v55 = vld [vmem:[#allocation2 + $0x140] sm:$0xff]  ;;  %v595_v56 = vpack.c.bf16 %v92_v50, %v91_v49  ;;  %v62_v59 = vld [vmem:[#allocation2 + $0xd8] sm:$0xff]  ;;  %v679_v50 = vmov 0.0|0.0  }
  0x20   :  { %590 = vmatpush3.bf16.msra.mxu1 %v589_v38  ;;  %v76_v57 = vld [vmem:[#allocation2 + $0x148] sm:$0xff]  ;;  %v93_v60 = vld [vmem:[#allocation2 + $0x1d0] sm:$0xff]  ;;  %v94_v61 = vld [vmem:[#allocation2 + $0x1d8] sm:$0xff]  ;;  %v565_v62 = vpack.c.bf16 %v44_v54, %v43_v53  ;;  %v567_v0 = vpack.c.bf16 %v62_v59, %v61_v58 }
  0x21   :  { %592 = vmatprep.subr.bf16.mxu1 %v591_v43  ;;  %v597_v63 = vpack.c.bf16 %v76_v57, %v75_v55  ;;  %v45_v1 = vld [vmem:[#allocation2 + $0x50] sm:$0xff]  ;;  %v46_v2 = vld [vmem:[#allocation2 + $0x58] sm:$0xff]  ;;  %v599_v4 = vpack.c.bf16 %v94_v61, %v93_v60  ;;  %v63_v6 = vld [vmem:[#allocation2 + $0xe0] sm:$0xff]  ;;  %v681_v60 = vmov 0.0  }
  0x22   :  { %562 = vmatpush3.bf16.msra.mxu0 %v561_v48  ;;  %v77_v3 = vld [vmem:[#allocation2 + $0x150] sm:$0xff]  ;;  %v78_v5 = vld [vmem:[#allocation2 + $0x158] sm:$0xff]  ;;  %v64_v7 = vld [vmem:[#allocation2 + $0xe8] sm:$0xff]  ;;  %v569_v10 = vpack.c.bf16 %v46_v2, %v45_v1 }
  0x23   :  { %564 = vmatprep.subr.bf16.mxu0 %v563_v52  ;;  %v95_v8 = vld [vmem:[#allocation2 + $0x1e0] sm:$0xff]  ;;  %v96_v9 = vld [vmem:[#allocation2 + $0x1e8] sm:$0xff]  ;;  %v601_v13 = vpack.c.bf16 %v78_v5, %v77_v3  ;;  %v571_v14 = vpack.c.bf16 %v64_v7, %v63_v6  ;;  %v65_v19 = vld [vmem:[#allocation2 + $0xf0] sm:$0xff] }
  0x24   :  { %594 = vmatpush3.bf16.msra.mxu1 %v593_v51  ;;  %v47_v11 = vld [vmem:[#allocation2 + $0x60] sm:$0xff]  ;;  %v29_v12 = vld [vmem:[%s741_s0 + $0x8] sm:$0xff]  ;;  %v603_v18 = vpack.c.bf16 %v96_v9, %v95_v8  ;;  %v66_v20 = vld [vmem:[#allocation2 + $0xf8] sm:$0xff] }
  0x25   :  { %596 = vmatprep.subr.bf16.mxu1 %v595_v56  ;;  %v48_v15 = vld [vmem:[#allocation2 + $0x68] sm:$0xff]  ;;  %v79_v16 = vld [vmem:[#allocation2 + $0x160] sm:$0xff]  ;;  %208 = vmatprep.mubr.f32.mxu0 %v29_v12  ;;  %v31_v21 = vld [vmem:[%s741_s0 + $0x18] sm:$0xff]  ;;  %v575_v26 = vpack.c.bf16 %v66_v20, %v65_v19 }
  0x26   :  { %566 = vmatpush3.bf16.msra.mxu0 %v565_v62  ;;  %v80_v17 = vld [vmem:[#allocation2 + $0x168] sm:$0xff]  ;;  %v97_v22 = vld [vmem:[#allocation2 + $0x1f0] sm:$0xff]  ;;  %v98_v23 = vld [vmem:[#allocation2 + $0x1f8] sm:$0xff]  ;;  %278 = vmatprep.mubr.f32.mxu1 %v31_v21  ;;  %v573_v24 = vpack.c.bf16 %v48_v15, %v47_v11 }
  0x27   :  { %568 = vmatprep.subr.bf16.mxu0 %v567_v0  ;;  %v605_v25 = vpack.c.bf16 %v80_v17, %v79_v16  ;;  %v49_v27 = vld [vmem:[#allocation2 + $0x70] sm:$0xff]  ;;  %v50_v28 = vld [vmem:[#allocation2 + $0x78] sm:$0xff]  ;;  %v607_v30 = vpack.c.bf16 %v98_v23, %v97_v22  ;;  %v115_v32 = vld [vmem:[#allocation2 + $0x280] sm:$0xff] }
  0x28   :  { %598 = vmatpush3.bf16.msra.mxu1 %v597_v63  ;;  %v81_v29 = vld [vmem:[#allocation2 + $0x170] sm:$0xff]  ;;  %v82_v31 = vld [vmem:[#allocation2 + $0x178] sm:$0xff]  ;;  %v116_v33 = vld [vmem:[#allocation2 + $0x288] sm:$0xff]  ;;  %v577_v34 = vpack.c.bf16 %v50_v28, %v49_v27 }
  0x29   :  { %600 = vmatprep.subr.bf16.mxu1 %v599_v4  ;;  %v609_v35 = vpack.c.bf16 %v82_v31, %v81_v29  ;;  %v611_v36 = vpack.c.bf16 %v116_v33, %v115_v32  ;;  %v99_v37 = vld [vmem:[#allocation2 + $0x200] sm:$0xff]  ;;  %v100_v38 = vld [vmem:[#allocation2 + $0x208] sm:$0xff]  ;;  %v117_v39 = vld [vmem:[#allocation2 + $0x290] sm:$0xff] }
  0x2a   :  { %570 = vmatpush3.bf16.msra.mxu0 %v569_v10  ;;  %v118_v40 = vld [vmem:[#allocation2 + $0x298] sm:$0xff]  ;;  %v28_v41 = vld [vmem:[%s741_s0] sm:$0xff]  ;;  %v613_v42 = vpack.c.bf16 %v100_v38, %v99_v37  ;;  %v30_v43 = vld [vmem:[%s741_s0 + $0x10] sm:$0xff] }
  0x2b   :  { %572 = vmatprep.subr.bf16.mxu0 %v571_v14  ;;  %v101_v44 = vld [vmem:[#allocation2 + $0x210] sm:$0xff]  ;;  %v615_v45 = vpack.c.bf16 %v118_v40, %v117_v39  ;;  %v102_v46 = vld [vmem:[#allocation2 + $0x218] sm:$0xff]  ;;  %v119_v47 = vld [vmem:[#allocation2 + $0x2a0] sm:$0xff] }
  0x2c   :  { %602 = vmatpush3.bf16.msra.mxu1 %v601_v13  ;;  %v120_v48 = vld [vmem:[#allocation2 + $0x2a8] sm:$0xff]  ;;  %v131_v51 = vld [vmem:[#allocation2 + $0x300] sm:$0xff]  ;;  %v617_v54 = vpack.c.bf16 %v102_v46, %v101_v44  ;;  %v121_v58 = vld [vmem:[#allocation2 + $0x2b0] sm:$0xff] }
  0x2d   :  { %604 = vmatprep.subr.bf16.mxu1 %v603_v18  ;;  %v33_v49 = vld [vmem:[%s741_s0 + $0x28] sm:$0xff]  ;;  %v619_v55 = vpack.c.bf16 %v120_v48, %v119_v47  ;;  %v103_v56 = vld [vmem:[#allocation2 + $0x220] sm:$0xff]  ;;  %v122_v59 = vld [vmem:[#allocation2 + $0x2b8] sm:$0xff] }
  0x2e   :  { %574 = vmatpush3.bf16.msra.mxu0 %v573_v24  ;;  %v132_v52 = vld [vmem:[#allocation2 + $0x308] sm:$0xff]  ;;  %v34_v61 = vld [vmem:[%s741_s0 + $0x30] sm:$0xff]  ;;  %v623_v63 = vpack.c.bf16 %v122_v59, %v121_v58  ;;  %v106_v1 = vld [vmem:[#allocation2 + $0x238] sm:$0xff] }
  0x2f   :  { %576 = vmatprep.subr.bf16.mxu0 %v575_v26  ;;  %v644_v53 = vpack.c.bf16 %v132_v52, %v131_v51  ;;  %v104_v57 = vld [vmem:[#allocation2 + $0x228] sm:$0xff]  ;;  %v105_v0 = vld [vmem:[#allocation2 + $0x230] sm:$0xff]  ;;  %v123_v2 = vld [vmem:[#allocation2 + $0x2c0] sm:$0xff] }
  0x30   :  { %606 = vmatpush3.bf16.msra.mxu1 %v605_v25  ;;  %v621_v62 = vpack.c.bf16 %v104_v57, %v103_v56  ;;  %v124_v3 = vld [vmem:[#allocation2 + $0x2c8] sm:$0xff]  ;;  %v625_v4 = vpack.c.bf16 %v106_v1, %v105_v0  ;;  %v107_v6 = vld [vmem:[#allocation2 + $0x240] sm:$0xff]  ;;  %v125_v8 = vld [vmem:[#allocation2 + $0x2d0] sm:$0xff] }
  0x31   :  { %608 = vmatprep.subr.bf16.mxu1 %v607_v30  ;;  %v627_v5 = vpack.c.bf16 %v124_v3, %v123_v2  ;;  %v108_v7 = vld [vmem:[#allocation2 + $0x248] sm:$0xff]  ;;  %v126_v9 = vld [vmem:[#allocation2 + $0x2d8] sm:$0xff]  ;;  %v109_v12 = vld [vmem:[#allocation2 + $0x250] sm:$0xff] }
  0x32   :  { %578 = vmatpush3.bf16.msra.mxu0 %v577_v34  ;;  %v629_v10 = vpack.c.bf16 %v108_v7, %v107_v6  ;;  %v631_v11 = vpack.c.bf16 %v126_v9, %v125_v8  ;;  %v110_v13 = vld [vmem:[#allocation2 + $0x258] sm:$0xff]  ;;  %v127_v14 = vld [vmem:[#allocation2 + $0x2e0] sm:$0xff]  ;;  %v128_v15 = vld [vmem:[#allocation2 + $0x2e8] sm:$0xff] }
  0x33   :  { %612 = vmatprep.subr.bf16.mxu0 %v611_v36  ;;  %v633_v16 = vpack.c.bf16 %v110_v13, %v109_v12  ;;  %v635_v17 = vpack.c.bf16 %v128_v15, %v127_v14  ;;  %v111_v18 = vld [vmem:[#allocation2 + $0x260] sm:$0xff]  ;;  %v112_v19 = vld [vmem:[#allocation2 + $0x268] sm:$0xff]  ;;  %v129_v20 = vld [vmem:[#allocation2 + $0x2f0] sm:$0xff] }
  0x34   :  { %610 = vmatpush3.bf16.msra.mxu1 %v609_v35  ;;  %v130_v21 = vld [vmem:[#allocation2 + $0x2f8] sm:$0xff]  ;;  %v637_v22 = vpack.c.bf16 %v112_v19, %v111_v18  ;;  %v113_v24 = vld [vmem:[#allocation2 + $0x270] sm:$0xff]  ;;  %v32_v27 = vld [vmem:[%s741_s0 + $0x20] sm:$0xff] }
  0x35   :  { %643 = vmatprep.subr.bf16.mxu1 %v679_v50  ;;  %209 = vmatmul.mubr.f32.vlgmr.msra.gmra.mrb[0].mxu0 %v28_v41  ;;  %v639_v23 = vpack.c.bf16 %v130_v21, %v129_v20  ;;  %v114_v25 = vld [vmem:[#allocation2 + $0x278] sm:$0xff]  ;;  %v430_v29 = vld [vmem:[%s743_s2] ss:$0 sm:$0xff] }
  0x36   :  { %614 = vmatpush3.bf16.msra.mxu0 %v613_v42  ;;  %348 = vmatprep.mubr.f32.mxu0 %v33_v49  ;;  %v641_v26 = vpack.c.bf16 %v114_v25, %v113_v24 }
  0x37   :  { %279 = vmatmul.mubr.f32.vlgmr.msra.gmra.mrb[0].mxu1 %v30_v43  ;;  %616 = vmatprep.subr.bf16.mxu0 %v615_v45 }
  0x38   :  { %645 = vmatpush3.bf16.msra.mxu1 %v644_v53  ;;  %544 = vmatprep.mubr.msk.f32.mxu1 %vm680_vm0, %v681_v60 }
  0x3a   :  { %618 = vmatpush3.bf16.msra.mxu0 %v617_v54 }
  0x3b   :  { %620 = vmatprep.subr.bf16.mxu0 %v619_v55  ;;  %545 = vmatmul.mubr.msk.f32.vlgmr.msra.gmra.mrb[2].mxu1 %vm140_vm1, %v34_v61 }
  0x3e   :  { %622 = vmatpush3.bf16.msra.mxu0 %v621_v62 }
  0x3f   :  { %624 = vmatprep.subr.bf16.mxu0 %v623_v63 }
  0x42   :  { %626 = vmatpush3.bf16.msra.mxu0 %v625_v4 }
  0x43   :  { %628 = vmatprep.subr.bf16.mxu0 %v627_v5 }
  0x46   :  { %630 = vmatpush3.bf16.msra.mxu0 %v629_v10 }
  0x47   :  { %632 = vmatprep.subr.bf16.mxu0 %v631_v11 }
  0x4a   :  { %634 = vmatpush3.bf16.msra.mxu0 %v633_v16 }
  0x4b   :  { %636 = vmatprep.subr.bf16.mxu0 %v635_v17 }
  0x4e   :  { %638 = vmatpush3.bf16.msra.mxu0 %v637_v22 }
  0x4f   :  { %640 = vmatprep.subr.bf16.mxu0 %v639_v23 }
  0x52   :  { %642 = vmatpush3.bf16.msra.mxu0 %v641_v26 }
  0x55   :  { %349 = vmatmul.mubr.f32.vlgmr.msra.gmra.mrb[2].mxu0 %v32_v27 }
 0x108   :  { %v464_v28 = vpop.f32.mrb[0].mxu0 }
 0x109   :  { %v465_v30 = vpop.f32.mrb[1].mxu0 }
 0x10a   :  { %v499_v31 = vpop.f32.mrb[0].mxu1  ;;  %v466_v32 = vadd.f32 %v465_v30, %v464_v28 }
 0x10b   :  { %v500_v33 = vpop.f32.mrb[1].mxu1 }
 0x10c   :  { %v501_v34 = vadd.f32 %v500_v33, %v499_v31  ;;  %v211_v35 = vadd.f32 %v466_v32, %v430_v29 }
 0x10e   :  { %v281_v36 = vadd.f32 %v501_v34, %v211_v35  ;;  %v420_v37 = vpop.f32.mrb[2].mxu1 }
 0x10f   :  { %v546_v38 = vpop.f32.mrb[3].mxu1 }
 0x128   :  { %v534_v39 = vpop.f32.mrb[2].mxu0 }
 0x129   :  { %v535_v40 = vpop.f32.mrb[3].mxu0 }
 0x12a   :  { %v536_v41 = vadd.f32 %v535_v40, %v534_v39 }
 0x12c   :  { %v351_v42 = vadd.f32 %v536_v41, %v281_v36 }
 0x12e   :  { %v421_v43 = vadd.f32 %v420_v37, %v351_v42 }
 0x130   :  { %424 = vst [vmem:[%s744_s3] sm:$0xff] %v421_v43 }
 0x131   :  { %429 = vsyncpa [#allocation3], 1 }

</bundles_post_ra>
